<compile_context>
chip_gen: v7x
topology: tpu7x:2x2x1
jax: 0.10.0
libtpu: 0.0.40
codegen_flags: <defaults>
</compile_context>

<pallas_src>
import jax
import jax.numpy as jnp
from jax import lax
from jax.experimental import pallas as pl
from jax.experimental.pallas import tpu as pltpu


# -----------------------------------------------------------------------------
# Deterministic pywt.Wavelet('db2') coefficients (hardcoded, no pywt import).
# The PyTorch module stores dec_lo[::-1] and dec_hi[::-1].
# -----------------------------------------------------------------------------
_DB2_DEC_LO = [-0.12940952255092145, 0.22414386804185735,
               0.836516303737469, 0.48296291314469025]
_DB2_DEC_HI = [-0.48296291314469025, 0.836516303737469,
               -0.22414386804185735, -0.12940952255092145]

W_L = jnp.asarray(_DB2_DEC_LO[::-1], dtype=jnp.float32)   # (4,)
W_H = jnp.asarray(_DB2_DEC_HI[::-1], dtype=jnp.float32)   # (4,)


def _next_pow2(n: int) -> int:
    return 1 << (int(n) - 1).bit_length()


def _make_circulant(filt: jnp.ndarray, shift: int, n: int) -> jnp.ndarray:
    """M[k, m] = filt_pad[(m + shift - k) mod n]; X @ M == circ-conv(X, filt) rolled by -shift."""
    fpad = jnp.zeros((n,), jnp.float32).at[: filt.shape[0]].set(filt)
    k = jnp.arange(n)[:, None]
    m = jnp.arange(n)[None, :]
    return fpad[(m + shift - k) % n]


# -----------------------------------------------------------------------------
# Pallas kernel: 3 fused circulant dots, un-transposed + cropped quadrant stores.
# -----------------------------------------------------------------------------
def _dwt_kernel(x_ref, s_ref, ll_ref, lh_ref, hl_ref, hh_ref):
    """
    x_ref : (tb, N, N)   zero-padded images, h = sublane, w = lane  (compute dtype)
    s_ref : (N, 2N)      [AL | AH]  shared circulant weights        (compute dtype)
    ll/lh/hl/hh_ref : (tb, H, W)    un-transposed, cropped quadrants (out dtype)
    """
    n = s_ref.shape[0]
    cdt = s_ref.dtype
    h_out = ll_ref.shape[1]
    w_out = ll_ref.shape[2]
    s = s_ref[...]

    # Stage 1 (vertical filtering, contraction over h):
    # U[b, w, c] = sum_h X[b, h, w] * S[h, c]  ->  [ (AL^T X)^T | (AH^T X)^T ]
    u = lax.dot_general(x_ref[...], s,
                        dimension_numbers=(((1,), (0,)), ((), ())),
                        preferred_element_type=jnp.float32)        # (tb, N, 2N) f32

    # Stage 2, L branch (contraction over w):  RL = [ LL | HL ]  in (b, h, w) layout.
    # (bf16 compute path double-rounds the f32 stage-1 accumulator here; documented.)
    rl = lax.dot_general(u[:, :, 0:n].astype(cdt), s,
                         dimension_numbers=(((1,), (0,)), ((), ())),
                         preferred_element_type=jnp.float32)       # (tb, N, 2N) f32
    ll_ref[...] = rl[:, 0:h_out, 0:w_out].astype(ll_ref.dtype)
    hl_ref[...] = rl[:, 0:h_out, n:n + w_out].astype(hl_ref.dtype)

    # Stage 2, H branch:  RH = [ LH | HH ].
    rh = lax.dot_general(u[:, :, n:2 * n].astype(cdt), s,
                         dimension_numbers=(((1,), (0,)), ((), ())),
                         preferred_element_type=jnp.float32)       # (tb, N, 2N) f32
    lh_ref[...] = rh[:, 0:h_out, 0:w_out].astype(lh_ref.dtype)
    hh_ref[...] = rh[:, 0:h_out, n:n + w_out].astype(hh_ref.dtype)


# -----------------------------------------------------------------------------
# Generation-aware tiling.
# -----------------------------------------------------------------------------
def _num_tensorcores() -> int:
    """Best-effort TensorCore-per-chip count (v7x = 2); default 1 (v5e/v6e)."""
    try:
        info = pltpu.get_tpu_info()
        for name in ("num_cores", "num_tensorcores", "tensorcore_count", "cores_per_chip"):
            v = getattr(info, name, None)
            if v:
                return int(v)
    except Exception:
        pass
    try:
        v = getattr(jax.devices()[0], "num_cores", None)
        if v:
            return int(v)
    except Exception:
        pass
    return 1


def _select_tiling(bc: int, n: int, h: int, w: int,
                   compute_dtype, out_dtype) -> tuple[int, int]:
    try:
        vmem_cap = int(pltpu.get_tpu_info().vmem_capacity_bytes)
    except Exception:
        vmem_cap = 64 * 1024 * 1024          # v7x per-core size: safe lower bound
    vmem_limit = min(int(vmem_cap * 0.9), 100 * 1024 * 1024)
    budget = int(vmem_limit * 0.75)          # headroom for compiler scratch / relayouts

    in_item = jnp.dtype(compute_dtype).itemsize
    out_item = jnp.dtype(out_dtype).itemsize
    # per image: x block (double-buffered) + 4 cropped out blocks (double-buffered)
    #            + live f32 intermediates (U + one branch result + possible lowered
    #              LHS-transpose copies / cast copies).
    per_tb = (n * n * 2 * in_item
              + 4 * h * w * 2 * out_item
              + n * n * 32)
    fixed = 4 * n * n * in_item              # (N, 2N) weight operand, double-buffered

    avail = budget - fixed
    if avail < per_tb:
        # TODO(synk): very large N (>= ~512 f32 on v7x 64 MiB VMEM) should switch to a
        # 4-tap roll+FMA FIR path or tile the lane dim; here we run tb=1 and push the
        # limit toward physical capacity as a best effort.
        tb = 1
        vmem_limit = min(int(vmem_cap * 0.98),
                         max(vmem_limit, fixed + per_tb + (8 << 20)))
    else:
        tb = min(avail // per_tb, 256)       # raised cap (was 32)
    tb = max(1, min(tb, bc))
    if _num_tensorcores() >= 2 and bc >= 2:
        # only on multi-TensorCore chips (v7x): keep >= 2 grid steps so both cores
        # get work under dimension_semantics=("parallel",)
        tb = min(tb, (bc + 1) // 2)
    return int(tb), int(vmem_limit)


# -----------------------------------------------------------------------------
# Wrapper: equivalent of DWT_2D_FFT_L2(wave='db2').forward(x), x NCHW.
# -----------------------------------------------------------------------------
def dwt_2d_fft_l2(x: jnp.ndarray,
                  w_l: jnp.ndarray = W_L,
                  w_h: jnp.ndarray = W_H,
                  *,
                  compute_dtype=jnp.float32,
                  out_dtype=jnp.float32,
                  block_images: int | None = None):
    """Returns (LL, LH, HL, HH), each (B, C, H, W) in `out_dtype`.

    compute_dtype=jnp.bfloat16 uses bf16 MXU operands with f32 accumulation
    (note: the f32 stage-1 accumulator is re-rounded to bf16 before stage 2, a
    documented double rounding).  out_dtype=jnp.bfloat16 halves the dominant HBM
    output stream when downstream tolerates it.
    """
    B, C, H, W = x.shape
    N = max(_next_pow2(H), _next_pow2(W))
    pad_h, pad_w = N - H, N - W

    w_l = jnp.ravel(jnp.asarray(w_l, jnp.float32))
    w_h = jnp.ravel(jnp.asarray(w_h, jnp.float32))
    shift_l = int(w_l.shape[0]) // 2
    shift_h = int(w_h.shape[0]) // 2
    # dec_lo / dec_hi always have equal length, so the two roll shifts coincide and
    # only two circulants are needed.
    # TODO(synk): unequal-length custom filters would need the 4-circulant variant.
    assert shift_l == shift_h, "unequal filter lengths need the 4-circulant path"
    assert int(w_l.shape[0]) <= N and int(w_h.shape[0]) <= N

    AL = _make_circulant(w_l, shift_l, N)            # (N, N)
    AH = _make_circulant(w_h, shift_h, N)            # (N, N)
    S = jnp.concatenate([AL, AH], axis=1).astype(compute_dtype)   # (N, 2N), shared

    BC = B * C
    xf = x.reshape(BC, H, W)
    if pad_h or pad_w:
        xf = jnp.pad(xf, ((0, 0), (0, pad_h), (0, pad_w)))
    xf = xf.astype(compute_dtype)                     # (BC, N, N)

    tb, vmem_limit = _select_tiling(BC, N, H, W, compute_dtype, out_dtype)
    if block_images is not None:
        tb = max(1, min(int(block_images), BC))
    grid = (pl.cdiv(BC, tb),)                         # ragged last block is fine:
                                                      # OOB reads are per-image garbage
                                                      # that never mixes, OOB writes
                                                      # are masked by Pallas.

    # Advisory cost estimate: 3 dots per image, each (N, N) x (N, 2N).
    in_item = jnp.dtype(compute_dtype).itemsize
    out_item = jnp.dtype(out_dtype).itemsize
    flops = 12 * BC * N * N * N
    bytes_accessed = BC * N * N * in_item + 2 * N * N * in_item + 4 * BC * H * W * out_item

    qshape = jax.ShapeDtypeStruct((BC, H, W), out_dtype)
    qspec = pl.BlockSpec((tb, H, W), lambda i: (i, 0, 0))

    # NOTE: for tiny H/W (< 128 lanes) the quadrant stores are masked partial writes;
    # that regime is grid-step-overhead bound anyway, so tb is simply maximized.
    ll, lh, hl, hh = pl.pallas_call(
        _dwt_kernel,
        out_shape=(qshape, qshape, qshape, qshape),
        grid=grid,
        in_specs=[
            pl.BlockSpec((tb, N, N), lambda i: (i, 0, 0)),
            pl.BlockSpec((N, 2 * N), lambda i: (0, 0)),   # grid-invariant weights
        ],
        out_specs=(qspec, qspec, qspec, qspec),
        compiler_params=pltpu.CompilerParams(
            dimension_semantics=("parallel",),
            vmem_limit_bytes=vmem_limit),
        cost_estimate=pl.CostEstimate(flops=flops, transcendentals=0,
                                      bytes_accessed=int(bytes_accessed)),
    )(xf, S)

    # Wrapper is now a pure (free) reshape: no crop, no transpose, no HBM pass.
    # TODO(synk): the original PyTorch code slices [:-pad_h, :-pad_w] and is buggy
    # when exactly one padding is zero (empty slice); we crop to (H, W) instead.
    ll = ll.reshape(B, C, H, W)
    lh = lh.reshape(B, C, H, W)
    hl = hl.reshape(B, C, H, W)
    hh = hh.reshape(B, C, H, W)
    return ll, lh, hl, hh


# -----------------------------------------------------------------------------
# Pure-JAX FFT reference (mirrors the PyTorch autograd Function line by line).
# -----------------------------------------------------------------------------
def _ref_dwt(x, w_l=W_L, w_h=W_H):
    B, C, H, W = x.shape
    N = max(_next_pow2(H), _next_pow2(W))
    xp = jnp.pad(x, ((0, 0), (0, 0), (0, N - H), (0, N - W)))
    fl = jnp.pad(w_l, (0, N - w_l.shape[0]))
    fh = jnp.pad(w_h, (0, N - w_h.shape[0]))
    sl = int(w_l.shape[0] // 2)
    sh = int(w_h.shape[0] // 2)

    X = jnp.fft.fft(xp, axis=3)
    FL = jnp.fft.fft(fl)
    FH = jnp.fft.fft(fh)
    xl = jnp.real(jnp.fft.ifft(X * FL, axis=3))
    xh = jnp.real(jnp.fft.ifft(X * FH, axis=3))
    xl = jnp.roll(xl, -sl, axis=-1)
    xh = jnp.roll(xh, -sh, axis=-1)
    xlt = jnp.swapaxes(xl, -2, -1)
    xht = jnp.swapaxes(xh, -2, -1)
    XL = jnp.fft.fft(xlt, axis=3)
    XH = jnp.fft.fft(xht, axis=3)
    ll = jnp.real(jnp.fft.ifft(XL * FL, axis=3))
    lh = jnp.real(jnp.fft.ifft(XL * FH, axis=3))
    hl = jnp.real(jnp.fft.ifft(XH * FL, axis=3))
    hh = jnp.real(jnp.fft.ifft(XH * FH, axis=3))
    ll = jnp.roll(ll, -sl, axis=-1)
    lh = jnp.roll(lh, -sl, axis=-1)
    hl = jnp.roll(hl, -sh, axis=-1)
    hh = jnp.roll(hh, -sh, axis=-1)
    ll = jnp.swapaxes(ll, -2, -1)
    lh = jnp.swapaxes(lh, -2, -1)
    hl = jnp.swapaxes(hl, -2, -1)
    hh = jnp.swapaxes(hh, -2, -1)
    if N - H == 0 and N - W == 0:
        return ll, lh, hl, hh
    return (ll[..., :H, :W], lh[..., :H, :W], hl[..., :H, :W], hh[..., :H, :W])


if __name__ == "__main__":
    key = jax.random.PRNGKey(0)

    # --- main test: (2, 4, 16, 16), exact-f32 path ---------------------------
    x = jax.random.normal(key, (2, 4, 16, 16), dtype=jnp.float32)
    out = jax.block_until_ready(dwt_2d_fft_l2(x))
    ref = _ref_dwt(x)
    for got, want in zip(out, ref):
        assert got.shape == want.shape, (got.shape, want.shape)
        assert jnp.allclose(got, want, rtol=2e-4, atol=2e-4), \
            float(jnp.max(jnp.abs(got - want)))

    # --- non-pow2 spatial test: exercises zero-pad + in-kernel crop ----------
    x2 = jax.random.normal(jax.random.fold_in(key, 1), (1, 3, 12, 10), dtype=jnp.float32)
    out2 = jax.block_until_ready(dwt_2d_fft_l2(x2))
    ref2 = _ref_dwt(x2)
    for got, want in zip(out2, ref2):
        assert got.shape == want.shape, (got.shape, want.shape)
        assert jnp.allclose(got, want, rtol=2e-4, atol=2e-4), \
            float(jnp.max(jnp.abs(got - want)))

    # --- ragged-grid test: tb does not divide B*C (OOB rows masked on store) --
    out3 = jax.block_until_ready(dwt_2d_fft_l2(x, block_images=3))
    for got, want in zip(out3, ref):
        assert got.shape == want.shape, (got.shape, want.shape)
        assert jnp.allclose(got, want, rtol=2e-4, atol=2e-4), \
            float(jnp.max(jnp.abs(got - want)))

    # --- bf16-operand / f32-accum / bf16-output fast path (loose check) ------
    out_bf = jax.block_until_ready(
        dwt_2d_fft_l2(x, compute_dtype=jnp.bfloat16, out_dtype=jnp.bfloat16))
    for got, want in zip(out_bf, ref):
        assert got.shape == want.shape, (got.shape, want.shape)
        rel = float(jnp.linalg.norm(got.astype(jnp.float32) - want) /
                    jnp.linalg.norm(want))
        assert rel < 3e-2, rel

    print("KERNEL_OK")
</pallas_src>

<mosaic_0001>
module attributes {stable_mosaic.version = 11 : i64} {
  func.func @_dwt_kernel(%arg0: i32, %arg1: memref<8x16x16xf32, #tpu.memory_space<vmem>>, %arg2: memref<16x32xf32, #tpu.memory_space<vmem>>, %arg3: memref<8x16x16xf32, #tpu.memory_space<vmem>>, %arg4: memref<8x16x16xf32, #tpu.memory_space<vmem>>, %arg5: memref<8x16x16xf32, #tpu.memory_space<vmem>>, %arg6: memref<8x16x16xf32, #tpu.memory_space<vmem>>) attributes {dimension_semantics = [#tpu.dimension_semantics<parallel>], iteration_bounds = array<i64: 1>, scalar_prefetch = 0 : i64, scratch_operands = 0 : i64, tpu.core_type = #tpu.core_type<tc>, window_params = [{transform_indices = @transform_0, window_bounds = array<i64: 8, 16, 16>}, {pipeline_mode = #tpu.pipeline_mode<synchronous>, transform_indices = @transform_1, window_bounds = array<i64: 16, 32>}, {transform_indices = @transform_2, window_bounds = array<i64: 8, 16, 16>}, {transform_indices = @transform_3, window_bounds = array<i64: 8, 16, 16>}, {transform_indices = @transform_4, window_bounds = array<i64: 8, 16, 16>}, {transform_indices = @transform_5, window_bounds = array<i64: 8, 16, 16>}]} {
    %c0 = arith.constant 0 : index
    %c0_0 = arith.constant 0 : index
    %0 = vector.load %arg2[%c0, %c0_0] : memref<16x32xf32, #tpu.memory_space<vmem>>, vector<16x32xf32>
    %c0_1 = arith.constant 0 : index
    %c0_2 = arith.constant 0 : index
    %c0_3 = arith.constant 0 : index
    %1 = vector.load %arg1[%c0_1, %c0_2, %c0_3] : memref<8x16x16xf32, #tpu.memory_space<vmem>>, vector<8x16x16xf32>
    %cst = arith.constant dense<0.000000e+00> : vector<8x16x32xf32>
    %2 = tpu.matmul %1, %0, %cst {dimension_numbers = #tpu.dot_dimension_numbers<[1], [0], [0, 2], [1], [0, 0, 0, 2, 1, 1], [], []>} : vector<8x16x16xf32>, vector<16x32xf32>, vector<8x16x32xf32> -> vector<8x16x32xf32>
    %3 = vector.extract_strided_slice %2 {offsets = [0, 0, 0], sizes = [8, 16, 16], strides = [1, 1, 1]} : vector<8x16x32xf32> to vector<8x16x16xf32>
    %cst_4 = arith.constant dense<0.000000e+00> : vector<8x16x32xf32>
    %4 = tpu.matmul %3, %0, %cst_4 {dimension_numbers = #tpu.dot_dimension_numbers<[1], [0], [0, 2], [1], [0, 0, 0, 2, 1, 1], [], []>} : vector<8x16x16xf32>, vector<16x32xf32>, vector<8x16x32xf32> -> vector<8x16x32xf32>
    %5 = vector.extract_strided_slice %4 {offsets = [0, 0, 0], sizes = [8, 16, 16], strides = [1, 1, 1]} : vector<8x16x32xf32> to vector<8x16x16xf32>
    %c0_5 = arith.constant 0 : index
    %c0_6 = arith.constant 0 : index
    %c0_7 = arith.constant 0 : index
    %6 = vector.load %arg3[%c0_5, %c0_6, %c0_7] : memref<8x16x16xf32, #tpu.memory_space<vmem>>, vector<8x16x16xf32>
    tpu.vector_store %arg3[%c0_5, %c0_6, %c0_7], %5 {strides = array<i32>} : memref<8x16x16xf32, #tpu.memory_space<vmem>>, vector<8x16x16xf32>,
    %7 = vector.extract_strided_slice %4 {offsets = [0, 0, 16], sizes = [8, 16, 16], strides = [1, 1, 1]} : vector<8x16x32xf32> to vector<8x16x16xf32>
    %c0_8 = arith.constant 0 : index
    %c0_9 = arith.constant 0 : index
    %c0_10 = arith.constant 0 : index
    %8 = vector.load %arg5[%c0_8, %c0_9, %c0_10] : memref<8x16x16xf32, #tpu.memory_space<vmem>>, vector<8x16x16xf32>
    tpu.vector_store %arg5[%c0_8, %c0_9, %c0_10], %7 {strides = array<i32>} : memref<8x16x16xf32, #tpu.memory_space<vmem>>, vector<8x16x16xf32>,
    %9 = vector.extract_strided_slice %2 {offsets = [0, 0, 16], sizes = [8, 16, 16], strides = [1, 1, 1]} : vector<8x16x32xf32> to vector<8x16x16xf32>
    %cst_11 = arith.constant dense<0.000000e+00> : vector<8x16x32xf32>
    %10 = tpu.matmul %9, %0, %cst_11 {dimension_numbers = #tpu.dot_dimension_numbers<[1], [0], [0, 2], [1], [0, 0, 0, 2, 1, 1], [], []>} : vector<8x16x16xf32>, vector<16x32xf32>, vector<8x16x32xf32> -> vector<8x16x32xf32>
    %11 = vector.extract_strided_slice %10 {offsets = [0, 0, 0], sizes = [8, 16, 16], strides = [1, 1, 1]} : vector<8x16x32xf32> to vector<8x16x16xf32>
    %c0_12 = arith.constant 0 : index
    %c0_13 = arith.constant 0 : index
    %c0_14 = arith.constant 0 : index
    %12 = vector.load %arg4[%c0_12, %c0_13, %c0_14] : memref<8x16x16xf32, #tpu.memory_space<vmem>>, vector<8x16x16xf32>
    tpu.vector_store %arg4[%c0_12, %c0_13, %c0_14], %11 {strides = array<i32>} : memref<8x16x16xf32, #tpu.memory_space<vmem>>, vector<8x16x16xf32>,
    %13 = vector.extract_strided_slice %10 {offsets = [0, 0, 16], sizes = [8, 16, 16], strides = [1, 1, 1]} : vector<8x16x32xf32> to vector<8x16x16xf32>
    %c0_15 = arith.constant 0 : index
    %c0_16 = arith.constant 0 : index
    %c0_17 = arith.constant 0 : index
    %14 = vector.load %arg6[%c0_15, %c0_16, %c0_17] : memref<8x16x16xf32, #tpu.memory_space<vmem>>, vector<8x16x16xf32>
    tpu.vector_store %arg6[%c0_15, %c0_16, %c0_17], %13 {strides = array<i32>} : memref<8x16x16xf32, #tpu.memory_space<vmem>>, vector<8x16x16xf32>,
    return
  }
  func.func @transform_0(%arg0: i32) -> (i32, i32, i32) {
    %c0_i32 = arith.constant 0 : i32
    %c0_i32_0 = arith.constant 0 : i32
    %c0_i32_1 = arith.constant 0 : i32
    return %arg0, %c0_i32, %c0_i32_0 : i32, i32, i32
  }
  func.func @transform_1(%arg0: i32) -> (i32, i32) {
    %c0_i32 = arith.constant 0 : i32
    %c0_i32_0 = arith.constant 0 : i32
    %c0_i32_1 = arith.constant 0 : i32
    return %c0_i32, %c0_i32_0 : i32, i32
  }
  func.func @transform_2(%arg0: i32) -> (i32, i32, i32) {
    %c0_i32 = arith.constant 0 : i32
    %c0_i32_0 = arith.constant 0 : i32
    %c0_i32_1 = arith.constant 0 : i32
    return %arg0, %c0_i32, %c0_i32_0 : i32, i32, i32
  }
  func.func @transform_3(%arg0: i32) -> (i32, i32, i32) {
    %c0_i32 = arith.constant 0 : i32
    %c0_i32_0 = arith.constant 0 : i32
    %c0_i32_1 = arith.constant 0 : i32
    return %arg0, %c0_i32, %c0_i32_0 : i32, i32, i32
  }
  func.func @transform_4(%arg0: i32) -> (i32, i32, i32) {
    %c0_i32 = arith.constant 0 : i32
    %c0_i32_0 = arith.constant 0 : i32
    %c0_i32_1 = arith.constant 0 : i32
    return %arg0, %c0_i32, %c0_i32_0 : i32, i32, i32
  }
  func.func @transform_5(%arg0: i32) -> (i32, i32, i32) {
    %c0_i32 = arith.constant 0 : i32
    %c0_i32_0 = arith.constant 0 : i32
    %c0_i32_1 = arith.constant 0 : i32
    return %arg0, %c0_i32, %c0_i32_0 : i32, i32, i32
  }
}

</mosaic_0001>

<bundles_post_ra>
// kernel: tpu_custom_call.1
= control target key start
LH: loop header
LB: loop body
LE: loop exit
PB: predicated region body
PF: predicated region fallthrough
CT: control target
= control target key end

     0   :  { %11 = vsyncpa [#allocation3], 0  ;;  %s2390_s0 = inlined_call_operand.hbm [shape: f32[8,16,16], index: 0, kind: input, shape index: {}]   ;;  %s2391_s1 = inlined_call_operand.hbm [shape: f32[16,32], index: 1, kind: input, shape index: {}]   ;;  %s2392_s2 = inlined_call_operand.hbm [shape: f32[8,16,16], index: 2, kind: output, shape index: {0}]   ;;  %s2393_s3 = inlined_call_operand.hbm [shape: f32[8,16,16], index: 3, kind: output, shape index: {1}]   ;;  %s2394_s4 = inlined_call_operand.hbm [shape: f32[8,16,16], index: 4, kind: output, shape index: {2}]   ;;  %s2395_s5 = inlined_call_operand.hbm [shape: f32[8,16,16], index: 5, kind: output, shape index: {3}]  }
   0x1   :  { %12 = vsyncpa [#allocation6], 0 }
   0x2   :  { %13 = vsyncpa [#allocation4], 0 }
   0x3   :  { %14 = vsyncpa [#allocation9], 0 }
   0x4   :  { %15 = vsyncpa [#allocation12], 0  ;;  %s2085_s18 = smov [#allocation2]   ;;  %s1943_s22 = scalar_lea.hbm %s2390_s0, 2048 }
   0x5   :  { %s21_s19 = sshll.u32 %s2085_s18, 4  ;;  %p1944_p0 = scmp.ne.s32.totalorder %s2390_s0, %s1943_s22  ;;  %s22_s19 = int_to_ptr.vmem [resolvable:$true] %s21_s19 }
   0x6   :  { %p1947_p1 = scmp.lt.u32.totalorder %s1943_s22, %s2390_s0 }
   0x8   :  { %p1949_p2 = pnand %p1947_p1, %p1944_p0 }
   0xa   :  { %1952 = shalt.err (!%p1949_p2)
}
   0xb   :  { %s1953_s27 = scalar_lea.vmem %s22_s19, 2048  ;;  %p1958_p4 = scmp.lt.s32.totalorder %s22_s19, %s22_s19 }
   0xc   :  { %p1954_p3 = scmp.ne.s32.totalorder %s22_s19, %s1953_s27  ;;  %p1959_p5 = scmp.lt.s32.totalorder %s1953_s27, %s1953_s27 }
   0xe   :  { %p1960_p6 = por %p1959_p5, %p1958_p4 }
  0x10   :  { %p1961_p7 = pnand %p1960_p6, %p1954_p3 }
  0x12   :  { %1964 = shalt.err (!%p1961_p7)
}
  0x13   :  { %s2086_s28 = smov 128   ;;  %s2087_s29 = smov 8  }
  0x14   :  { %27 = dma.hbm_to_vmem [thread:$0]  %s2390_s0, 2048, %s22_s19, [#allocation3], %s2086_s28, %s2086_s28, %s2087_s29  }
  0x15   :  { %s2088_s7 = smov [#allocation5]   ;;  %s1965_s11 = scalar_lea.hbm %s2391_s1, 256 }
  0x16   :  { %s33_s8 = sshll.u32 %s2088_s7, 4  ;;  %p1966_p8 = scmp.ne.s32.totalorder %s2391_s1, %s1965_s11  ;;  %s34_s8 = int_to_ptr.vmem [resolvable:$true] %s33_s8 }
  0x17   :  { %p1969_p9 = scmp.lt.u32.totalorder %s1965_s11, %s2391_s1 }
  0x19   :  { %p1971_p10 = pnand %p1969_p9, %p1966_p8 }
  0x1b   :  { %1974 = shalt.err (!%p1971_p10)
}
  0x1c   :  { %s1975_s16 = scalar_lea.vmem %s34_s8, 256  ;;  %p1980_p12 = scmp.lt.s32.totalorder %s34_s8, %s34_s8 }
  0x1d   :  { %p1976_p11 = scmp.ne.s32.totalorder %s34_s8, %s1975_s16  ;;  %p1981_p13 = scmp.lt.s32.totalorder %s1975_s16, %s1975_s16 }
  0x1f   :  { %p1982_p0 = por %p1981_p13, %p1980_p12 }
  0x21   :  { %p1983_p1 = pnand %p1982_p0, %p1976_p11 }
  0x23   :  { %1986 = shalt.err (!%p1983_p1)
}
  0x24   :  { %39 = dma.hbm_to_vmem [thread:$0]  %s2391_s1, 256, %s34_s8, [#allocation6], %s2086_s28, %s2086_s28, %s2087_s29  }
  0x25   :  { %2075 = dma.done.wait [#allocation3], 2048  }
  0x26   :  { %2076 = vsyncadd [#allocation3], 4294965248 }
  0x27   :  { %2077 = dma.done.wait [#allocation6], 256  }
  0x28   :  { %2078 = vsyncadd [#allocation6], 4294967040  ;;  %v48_v0 = vld [vmem:[#allocation2] sm:$0xff]  ;;  %v50_v1 = vld [vmem:[#allocation2 + $0x10] sm:$0xff]  ;;  %vm320_vm0 = vcmask 130048   ;;  %s2089_s1 = smov 112  }
  0x29   :  { %64 = vxpose.xlu0.b32.start [1/2] (short) (narrow) %v48_v0, 16  ;;  %96 = vxpose.xlu1.b32.start [1/2] (short) (narrow) %v50_v1, 16  ;;  %v49_v2 = vld [vmem:[#allocation2 + $0x8] sm:$0xff]  ;;  %v51_v3 = vld [vmem:[#allocation2 + $0x18] sm:$0xff]  ;;  %v46_v4 = vld [vmem:[#allocation5] sm:$0xff]  ;;  %s2090_s18 = smov [#allocation7]  }
  0x2a   :  { %v47_v5 = vld [vmem:[#allocation5 + $0x8] sm:$0xff]  ;;  %v52_v6 = vld [vmem:[#allocation2 + $0x20] sm:$0xff]  ;;  %v54_v7 = vld [vmem:[#allocation2 + $0x30] sm:$0xff]  ;;  %s1673_s19 = sshll.u32 %s2090_s18, 4  ;;  %s1674_s19 = int_to_ptr.vmem [resolvable:$true] %s1673_s19 }
  0x2b   :  { %v1919_v8 = vpack.c.bf16 %v47_v5, %v46_v4  ;;  %v53_v9 = vld [vmem:[#allocation2 + $0x28] sm:$0xff]  ;;  %v55_v10 = vld [vmem:[#allocation2 + $0x38] sm:$0xff]  ;;  %v56_v11 = vld [vmem:[#allocation2 + $0x40] sm:$0xff]  ;;  %s1987_s20 = scalar_lea.vmem %s1674_s19, 2048  ;;  %p1992_p3 = scmp.lt.s32.totalorder %s1674_s19, %s1674_s19 }
  0x2c   :  { %v58_v12 = vld [vmem:[#allocation2 + $0x50] sm:$0xff]  ;;  %v57_v13 = vld [vmem:[#allocation2 + $0x48] sm:$0xff]  ;;  %v59_v14 = vld [vmem:[#allocation2 + $0x58] sm:$0xff]  ;;  %p1988_p2 = scmp.ne.s32.totalorder %s1674_s19, %s1987_s20  ;;  %p1993_p4 = scmp.lt.s32.totalorder %s1987_s20, %s1987_s20 }
  0x2d   :  { %65 = vxpose.xlu0.b32.end [2/2] (short) (narrow) %v49_v2, 16  ;;  %97 = vxpose.xlu1.b32.end [2/2] (short) (narrow) %v51_v3, 16  ;;  %v60_v15 = vld [vmem:[#allocation2 + $0x60] sm:$0xff]  ;;  %v62_v16 = vld [vmem:[#allocation2 + $0x70] sm:$0xff]  ;;  %v61_v17 = vld [vmem:[#allocation2 + $0x68] sm:$0xff] }
  0x2e   :  { %1920 = vmatprep.subr.bf16.mxu0 %v1919_v8  ;;  %1931 = vmatprep.subr.bf16.mxu1 %v1919_v8  ;;  %v63_v18 = vld [vmem:[#allocation2 + $0x78] sm:$0xff]  ;;  %p1994_p5 = por %p1993_p4, %p1992_p3 }
  0x2f   :  { %1922 = vmatpush3.bf16.msra.mxu0 %v1919_v8  ;;  %1932 = vmatpush3.bf16.msra.mxu1 %v1919_v8 }
  0x30   :  { %1924 = vmatprep.subr.bf16.mxu1 %v1919_v8  ;;  %1928 = vmatprep.subr.bf16.mxu0 %v1919_v8  ;;  %p1995_p6 = pnand %p1994_p5, %p1988_p2 }
  0x31   :  { %128 = vxpose.xlu0.b32.start [1/2] (short) (narrow) %v52_v6, 16  ;;  %160 = vxpose.xlu1.b32.start [1/2] (short) (narrow) %v54_v7, 16 }
  0x35   :  { %129 = vxpose.xlu0.b32.end [2/2] (short) (narrow) %v53_v9, 16  ;;  %161 = vxpose.xlu1.b32.end [2/2] (short) (narrow) %v55_v10, 16 }
  0x39   :  { %192 = vxpose.xlu0.b32.start [1/2] (short) (narrow) %v56_v11, 16  ;;  %224 = vxpose.xlu1.b32.start [1/2] (short) (narrow) %v58_v12, 16 }
  0x3d   :  { %193 = vxpose.xlu0.b32.end [2/2] (short) (narrow) %v57_v13, 16  ;;  %225 = vxpose.xlu1.b32.end [2/2] (short) (narrow) %v59_v14, 16 }
  0x41   :  { %256 = vxpose.xlu0.b32.start [1/2] (short) (narrow) %v60_v15, 16  ;;  %288 = vxpose.xlu1.b32.start [1/2] (short) (narrow) %v62_v16, 16 }
  0x45   :  { %257 = vxpose.xlu0.b32.end [2/2] (short) (narrow) %v61_v17, 16  ;;  %289 = vxpose.xlu1.b32.end [2/2] (short) (narrow) %v63_v18, 16 }
  0xa9   :  { %v80_v19 = vpop.trf.xlu0  ;;  %v112_v20 = vpop.trf.xlu1 }
  0xaa   :  { %1839 = vmatprep.mubr.msk.f32.mxu0 %vm320_vm0, %v80_v19 }
  0xad   :  { %v81_v21 = vpop.trf.xlu0  ;;  %v113_v22 = vpop.trf.xlu1 }
  0xae   :  { %1840 = vmatmul.mubr.msk.f32.vlgmr.msra.gmra.mrb[0].mxu0 %vm320_vm0, %v81_v21 }
  0xaf   :  { %1842 = vmatprep.mubr.msk.f32.mxu0 %vm320_vm0, %v112_v20  ;;  %1930 = vmatpush3.bf16.msra.mxu0 %v1919_v8 }
  0xb1   :  { %v144_v23 = vpop.trf.xlu0  ;;  %v176_v24 = vpop.trf.xlu1 }
  0xb2   :  { %1843 = vmatmul.mubr.msk.f32.gmra.mrb[2].mxu0 %vm320_vm0, %v113_v22 }
  0xb3   :  { %1845 = vmatprep.mubr.msk.f32.mxu0 %vm320_vm0, %v144_v23 }
  0xb5   :  { %v145_v25 = vpop.trf.xlu0  ;;  %v177_v26 = vpop.trf.xlu1 }
  0xb6   :  { %1846 = vmatmul.mubr.msk.f32.gmra.mrb[4].mxu0 %vm320_vm0, %v145_v25 }
  0xb7   :  { %1848 = vmatprep.mubr.msk.f32.mxu0 %vm320_vm0, %v176_v24 }
  0xb9   :  { %v208_v27 = vpop.trf.xlu0  ;;  %v240_v28 = vpop.trf.xlu1 }
  0xba   :  { %1851 = vmatprep.mubr.msk.f32.mxu1 %vm320_vm0, %v208_v27  ;;  %1849 = vmatmul.mubr.msk.f32.gmra.mrb[6].mxu0 %vm320_vm0, %v177_v26 }
  0xbd   :  { %v209_v29 = vpop.trf.xlu0  ;;  %v241_v30 = vpop.trf.xlu1 }
  0xbe   :  { %1852 = vmatmul.mubr.msk.f32.vlgmr.msra.gmra.mrb[0].mxu1 %vm320_vm0, %v209_v29 }
  0xbf   :  { %1854 = vmatprep.mubr.msk.f32.mxu1 %vm320_vm0, %v240_v28  ;;  %1926 = vmatpush3.bf16.msra.mxu1 %v1919_v8 }
  0xc1   :  { %v272_v31 = vpop.trf.xlu0  ;;  %v304_v32 = vpop.trf.xlu1 }
  0xc2   :  { %1855 = vmatmul.mubr.msk.f32.gmra.mrb[2].mxu1 %vm320_vm0, %v241_v30 }
  0xc3   :  { %1857 = vmatprep.mubr.msk.f32.mxu1 %vm320_vm0, %v272_v31 }
  0xc5   :  { %v273_v33 = vpop.trf.xlu0  ;;  %v305_v34 = vpop.trf.xlu1 }
  0xc6   :  { %1858 = vmatmul.mubr.msk.f32.gmra.mrb[4].mxu1 %vm320_vm0, %v273_v33 }
  0xc7   :  { %1860 = vmatprep.mubr.msk.f32.mxu1 %vm320_vm0, %v304_v32 }
  0xca   :  { %1861 = vmatmul.mubr.msk.f32.gmra.mrb[6].mxu1 %vm320_vm0, %v305_v34 }
 0x181   :  { %v1841_v35 = vpop.f32.mrb[0].mxu0 }
 0x182   :  { %1077 = vrot.lane.b32.xlu1 %v1841_v35, %s2089_s1  ;;  %v435_v36 = vpop.f32.mrb[1].mxu0 }
 0x185   :  { %v1844_v37 = vpop.f32.mrb[2].mxu0 }
 0x186   :  { %v445_v38 = vpop.f32.mrb[3].mxu0 }
 0x189   :  { %v2171_v39 = vpop.f32.mrb[4].mxu0 }
 0x18a   :  { %v2173_v40 = vpop.f32.mrb[5].mxu0 }
 0x18d   :  { %v2175_v41 = vpop.f32.mrb[6].mxu0 }
 0x18e   :  { %v2177_v42 = vpop.f32.mrb[7].mxu0 }
 0x191   :  { %v1853_v43 = vpop.f32.mrb[0].mxu1 }
 0x192   :  { %1093 = vrot.lane.b32.xlu0 %v1853_v43, %s2089_s1  ;;  %v475_v44 = vpop.f32.mrb[1].mxu1 }
 0x193   :  { %1091 = vrot.lane.b32.xlu1 %v475_v44, %s2089_s1 }
 0x195   :  { %v1856_v45 = vpop.f32.mrb[2].mxu1 }
 0x196   :  { %1075 = vrot.lane.b32.xlu0 %v435_v36, %s2089_s1  ;;  %v485_v46 = vpop.f32.mrb[3].mxu1 }
 0x197   :  { %1081 = vrot.lane.b32.xlu1 %v1844_v37, %s2089_s1 }
 0x199   :  { %v1859_v47 = vpop.f32.mrb[4].mxu1 }
 0x19a   :  { %1097 = vrot.lane.b32.xlu0 %v1856_v45, %s2089_s1  ;;  %v495_v48 = vpop.f32.mrb[5].mxu1 }
 0x19b   :  { %1079 = vrot.lane.b32.xlu1 %v445_v38, %s2089_s1 }
 0x19d   :  { %v1862_v49 = vpop.f32.mrb[6].mxu1 }
 0x19e   :  { %1085 = vrot.lane.b32.xlu0 %v2171_v39, %s2089_s1  ;;  %v505_v50 = vpop.f32.mrb[7].mxu1 }
 0x19f   :  { %1095 = vrot.lane.b32.xlu1 %v485_v46, %s2089_s1 }
 0x1a2   :  { %1101 = vrot.lane.b32.xlu0 %v1859_v47, %s2089_s1 }
 0x1c0   :  { %546 = vxpose.xlu0.b32.start [1/2] (short) (narrow) %v445_v38, 16 }
 0x1c4   :  { %547 = vxpose.xlu0.b32.end [2/2] (short) (narrow) %v1844_v37, 16 }
 0x1c8   :  { %514 = vxpose.xlu1.b32.start [1/2] (short) (narrow) %v435_v36, 16 }
 0x1cc   :  { %515 = vxpose.xlu1.b32.end [2/2] (short) (narrow) %v1841_v35, 16 }
 0x1d0   :  { %642 = vxpose.xlu1.b32.start [1/2] (short) (narrow) %v475_v44, 16 }
 0x1d4   :  { %643 = vxpose.xlu1.b32.end [2/2] (short) (narrow) %v1853_v43, 16 }
 0x1ed   :  { %1089 = vrot.lane.b32.xlu0 %v2175_v41, %s2089_s1 }
 0x1f1   :  { %1105 = vrot.lane.b32.xlu0 %v1862_v49, %s2089_s1 }
 0x1f2   :  { %1083 = vrot.lane.b32.xlu1 %v2173_v40, %s2089_s1 }
 0x1f4   :  { %v1078_v52 = vpop.permute.xlu1 %1077 }
 0x204   :  { %v1094_v51 = vpop.permute.xlu0 %1093 }
 0x205   :  { %v1092_v54 = vpop.permute.xlu1 %1091 }
 0x208   :  { %v1076_v53 = vpop.permute.xlu0 %1075 }
 0x209   :  { %v1082_v55 = vpop.permute.xlu1 %1081 }
 0x20c   :  { %v1098_v58 = vpop.permute.xlu0 %1097 }
 0x20d   :  { %v1080_v56 = vpop.permute.xlu1 %1079 }
 0x20f   :  { %1123 = vxpose.xlu0.b32.start [1/2] (short) (narrow) %v1076_v53, 16 }
 0x210   :  { %v1086_v59 = vpop.permute.xlu0 %1085 }
 0x211   :  { %v1096_v57 = vpop.permute.xlu1 %1095 }
 0x213   :  { %1124 = vxpose.xlu0.b32.end [2/2] (short) (narrow) %v1078_v52, 16 }
 0x214   :  { %v1102_v60 = vpop.permute.xlu0 %1101 }
 0x217   :  { %1251 = vxpose.xlu0.b32.start [1/2] (short) (narrow) %v1092_v54, 16 }
 0x21b   :  { %674 = vxpose.xlu1.b32.start [1/2] (short) (narrow) %v485_v46, 16  ;;  %1252 = vxpose.xlu0.b32.end [2/2] (short) (narrow) %v1094_v51, 16 }
 0x21f   :  { %675 = vxpose.xlu1.b32.end [2/2] (short) (narrow) %v1856_v45, 16  ;;  %1155 = vxpose.xlu0.b32.start [1/2] (short) (narrow) %v1080_v56, 16 }
 0x223   :  { %1156 = vxpose.xlu0.b32.end [2/2] (short) (narrow) %v1082_v55, 16 }
 0x227   :  { %1283 = vxpose.xlu0.b32.start [1/2] (short) (narrow) %v1096_v57, 16 }
 0x22b   :  { %1284 = vxpose.xlu0.b32.end [2/2] (short) (narrow) %v1098_v58, 16 }
 0x23d   :  { %1087 = vrot.lane.b32.xlu1 %v2177_v42, %s2089_s1 }
 0x240   :  { %v562_v62 = vpop.trf.xlu0 }
 0x241   :  { %1099 = vrot.lane.b32.xlu1 %v495_v48, %s2089_s1 }
 0x244   :  { %v563_v0 = vpop.trf.xlu0 }
 0x245   :  { %1103 = vrot.lane.b32.xlu1 %v505_v50, %s2089_s1 }
 0x248   :  { %v530_v61 = vpop.trf.xlu1 }
 0x249   :  { %1867 = vmatprep.mubr.msk.f32.mxu1 %vm320_vm0, %v530_v61 }
 0x24c   :  { %v531_v63 = vpop.trf.xlu1 }
 0x24d   :  { %1868 = vmatmul.mubr.msk.f32.vlgmr.msra.gmra.mrb[8].mxu1 %vm320_vm0, %v531_v63 }
 0x24e   :  { %1870 = vmatprep.mubr.msk.f32.mxu1 %vm320_vm0, %v562_v62 }
 0x250   :  { %v658_v1 = vpop.trf.xlu1 }
 0x251   :  { %1871 = vmatmul.mubr.msk.f32.gmra.mrb[10].mxu1 %vm320_vm0, %v563_v0 }
 0x254   :  { %v659_v2 = vpop.trf.xlu1 }
 0x25f   :  { %v1090_v4 = vpop.permute.xlu0 %1089 }
 0x263   :  { %v1106_v5 = vpop.permute.xlu0 %1105 }
 0x264   :  { %v1084_v3 = vpop.permute.xlu1 %1083 }
 0x265   :  { %1187 = vxpose.xlu0.b32.start [1/2] (short) (narrow) %v1084_v3, 16 }
 0x269   :  { %1188 = vxpose.xlu0.b32.end [2/2] (short) (narrow) %v1086_v59, 16 }
 0x26e   :  { %578 = vxpose.xlu1.b32.start [1/2] (short) (narrow) %v2173_v40, 16 }
 0x272   :  { %579 = vxpose.xlu1.b32.end [2/2] (short) (narrow) %v2171_v39, 16 }
 0x276   :  { %610 = vxpose.xlu1.b32.start [1/2] (short) (narrow) %v2177_v42, 16 }
 0x27a   :  { %611 = vxpose.xlu1.b32.end [2/2] (short) (narrow) %v2175_v41, 16 }
 0x27e   :  { %706 = vxpose.xlu1.b32.start [1/2] (short) (narrow) %v495_v48, 16 }
 0x282   :  { %707 = vxpose.xlu1.b32.end [2/2] (short) (narrow) %v1859_v47, 16 }
 0x286   :  { %738 = vxpose.xlu1.b32.start [1/2] (short) (narrow) %v505_v50, 16 }
 0x28a   :  { %739 = vxpose.xlu1.b32.end [2/2] (short) (narrow) %v1862_v49, 16 }
 0x28f   :  { %v1139_v6 = vpop.trf.xlu0 }
 0x290   :  { %1895 = vmatprep.mubr.msk.f32.mxu0 %vm320_vm0, %v1139_v6 }
 0x293   :  { %v1140_v7 = vpop.trf.xlu0 }
 0x294   :  { %1896 = vmatmul.mubr.msk.f32.vlgmr.msra.gmra.mrb[8].mxu0 %vm320_vm0, %v1140_v7 }
 0x297   :  { %v1267_v8 = vpop.trf.xlu0 }
 0x29b   :  { %v1268_v9 = vpop.trf.xlu0  ;;  %v690_v11 = vpop.trf.xlu1 }
 0x29f   :  { %v1171_v10 = vpop.trf.xlu0  ;;  %v691_v13 = vpop.trf.xlu1 }
 0x2a0   :  { %1898 = vmatprep.mubr.msk.f32.mxu0 %vm320_vm0, %v1171_v10 }
 0x2a3   :  { %v1172_v12 = vpop.trf.xlu0 }
 0x2a4   :  { %1899 = vmatmul.mubr.msk.f32.gmra.mrb[10].mxu0 %vm320_vm0, %v1172_v12 }
 0x2a7   :  { %v1299_v17 = vpop.trf.xlu0 }
 0x2ab   :  { %v1300_v18 = vpop.trf.xlu0 }
 0x2af   :  { %v1088_v14 = vpop.permute.xlu1 %1087 }
 0x2b0   :  { %1219 = vxpose.xlu0.b32.start [1/2] (short) (narrow) %v1088_v14, 16 }
 0x2b3   :  { %v1100_v15 = vpop.permute.xlu1 %1099 }
 0x2b4   :  { %1220 = vxpose.xlu0.b32.end [2/2] (short) (narrow) %v1090_v4, 16 }
 0x2b7   :  { %v1104_v16 = vpop.permute.xlu1 %1103 }
 0x2b8   :  { %1315 = vxpose.xlu0.b32.start [1/2] (short) (narrow) %v1100_v15, 16 }
 0x2bc   :  { %1316 = vxpose.xlu0.b32.end [2/2] (short) (narrow) %v1102_v60, 16 }
 0x2c0   :  { %1347 = vxpose.xlu0.b32.start [1/2] (short) (narrow) %v1104_v16, 16 }
 0x2c4   :  { %1348 = vxpose.xlu0.b32.end [2/2] (short) (narrow) %v1106_v5, 16 }
 0x2e5   :  { %v1203_v19 = vpop.trf.xlu0 }
 0x2e6   :  { %1901 = vmatprep.mubr.msk.f32.mxu0 %vm320_vm0, %v1203_v19 }
 0x2e9   :  { %v1204_v20 = vpop.trf.xlu0 }
 0x2ea   :  { %1902 = vmatmul.mubr.msk.f32.gmra.mrb[12].mxu0 %vm320_vm0, %v1204_v20 }
 0x2ee   :  { %v594_v21 = vpop.trf.xlu1 }
 0x2ef   :  { %1873 = vmatprep.mubr.msk.f32.mxu1 %vm320_vm0, %v594_v21 }
 0x2f2   :  { %v595_v22 = vpop.trf.xlu1 }
 0x2f3   :  { %1874 = vmatmul.mubr.msk.f32.gmra.mrb[12].mxu1 %vm320_vm0, %v595_v22 }
 0x2f6   :  { %v626_v23 = vpop.trf.xlu1 }
 0x2f7   :  { %1876 = vmatprep.mubr.msk.f32.mxu1 %vm320_vm0, %v626_v23 }
 0x2fa   :  { %v627_v24 = vpop.trf.xlu1 }
 0x2fb   :  { %1877 = vmatmul.mubr.msk.f32.gmra.mrb[14].mxu1 %vm320_vm0, %v627_v24 }
 0x2fc   :  { %1879 = vmatprep.mubr.msk.f32.mxu1 %vm320_vm0, %v658_v1 }
 0x2fe   :  { %v722_v25 = vpop.trf.xlu1 }
 0x2ff   :  { %1880 = vmatmul.mubr.msk.f32.gmra.mrb[16].mxu1 %vm320_vm0, %v659_v2 }
 0x300   :  { %1882 = vmatprep.mubr.msk.f32.mxu1 %vm320_vm0, %v690_v11 }
 0x302   :  { %v723_v26 = vpop.trf.xlu1 }
 0x303   :  { %1883 = vmatmul.mubr.msk.f32.gmra.mrb[18].mxu1 %vm320_vm0, %v691_v13 }
 0x304   :  { %1885 = vmatprep.mubr.msk.f32.mxu1 %vm320_vm0, %v722_v25 }
 0x306   :  { %v754_v27 = vpop.trf.xlu1 }
 0x307   :  { %1886 = vmatmul.mubr.msk.f32.gmra.mrb[20].mxu1 %vm320_vm0, %v723_v26 }
 0x308   :  { %1888 = vmatprep.mubr.msk.f32.mxu1 %vm320_vm0, %v754_v27 }
 0x30a   :  { %v755_v28 = vpop.trf.xlu1 }
 0x30b   :  { %1889 = vmatmul.mubr.msk.f32.gmra.mrb[22].mxu1 %vm320_vm0, %v755_v28 }
 0x320   :  { %v1869_v29 = vpop.f32.mrb[8].mxu1 }
 0x321   :  { %964 = vst.msk [vmem:[#allocation7 + $0x8] sm:$0xff] %vm320_vm0, %v1869_v29  ;;  %v884_v30 = vpop.f32.mrb[9].mxu1  ;;  %997 = vrot.lane.b32.xlu0 %v1869_v29, %s2089_s1 }
 0x322   :  { %963 = vst.msk [vmem:[#allocation7] sm:$0xff] %vm320_vm0, %v884_v30  ;;  %995 = vrot.lane.b32.xlu1 %v884_v30, %s2089_s1 }
 0x324   :  { %v1872_v31 = vpop.f32.mrb[10].mxu1 }
 0x325   :  { %966 = vst.msk [vmem:[#allocation7 + $0x18] sm:$0xff] %vm320_vm0, %v1872_v31  ;;  %v894_v32 = vpop.f32.mrb[11].mxu1 }
 0x326   :  { %1001 = vrot.lane.b32.xlu1 %v1872_v31, %s2089_s1  ;;  %965 = vst.msk [vmem:[#allocation7 + $0x10] sm:$0xff] %vm320_vm0, %v894_v32 }
 0x32a   :  { %999 = vrot.lane.b32.xlu1 %v894_v32, %s2089_s1 }
 0x330   :  { %v1235_v33 = vpop.trf.xlu0 }
 0x331   :  { %1904 = vmatprep.mubr.msk.f32.mxu0 %vm320_vm0, %v1235_v33 }
 0x334   :  { %v1236_v34 = vpop.trf.xlu0 }
 0x335   :  { %1905 = vmatmul.mubr.msk.f32.gmra.mrb[14].mxu0 %vm320_vm0, %v1236_v34 }
 0x336   :  { %1907 = vmatprep.mubr.msk.f32.mxu0 %vm320_vm0, %v1267_v8 }
 0x338   :  { %v1331_v35 = vpop.trf.xlu0 }
 0x339   :  { %1908 = vmatmul.mubr.msk.f32.gmra.mrb[16].mxu0 %vm320_vm0, %v1268_v9 }
 0x33a   :  { %1910 = vmatprep.mubr.msk.f32.mxu0 %vm320_vm0, %v1299_v17 }
 0x33c   :  { %v1332_v36 = vpop.trf.xlu0 }
 0x33d   :  { %1911 = vmatmul.mubr.msk.f32.gmra.mrb[18].mxu0 %vm320_vm0, %v1300_v18 }
 0x33e   :  { %1913 = vmatprep.mubr.msk.f32.mxu0 %vm320_vm0, %v1331_v35 }
 0x340   :  { %v1363_v37 = vpop.trf.xlu0 }
 0x341   :  { %1914 = vmatmul.mubr.msk.f32.gmra.mrb[20].mxu0 %vm320_vm0, %v1332_v36 }
 0x342   :  { %1916 = vmatprep.mubr.msk.f32.mxu0 %vm320_vm0, %v1363_v37 }
 0x344   :  { %v1364_v38 = vpop.trf.xlu0 }
 0x345   :  { %1917 = vmatmul.mubr.msk.f32.gmra.mrb[22].mxu0 %vm320_vm0, %v1364_v38 }
 0x367   :  { %v1897_v39 = vpop.f32.mrb[8].mxu0 }
 0x368   :  { %1573 = vst.msk [vmem:[#allocation8 + $0x8] sm:$0xff] %vm320_vm0, %v1897_v39  ;;  %v1493_v40 = vpop.f32.mrb[9].mxu0 }
 0x369   :  { %1572 = vst.msk [vmem:[#allocation8] sm:$0xff] %vm320_vm0, %v1493_v40 }
 0x377   :  { %v1900_v41 = vpop.f32.mrb[10].mxu0 }
 0x378   :  { %1575 = vst.msk [vmem:[#allocation8 + $0x18] sm:$0xff] %vm320_vm0, %v1900_v41  ;;  %v1503_v42 = vpop.f32.mrb[11].mxu0 }
 0x379   :  { %1574 = vst.msk [vmem:[#allocation8 + $0x10] sm:$0xff] %vm320_vm0, %v1503_v42 }
 0x393   :  { %v998_v43 = vpop.permute.xlu0 %997 }
 0x394   :  { %1044 = vst.msk [vmem:[#allocation10 + $0x8] sm:$0xff] %vm320_vm0, %v998_v43  ;;  %v996_v44 = vpop.permute.xlu1 %995 }
 0x395   :  { %1043 = vst.msk [vmem:[#allocation10] sm:$0xff] %vm320_vm0, %v996_v44 }
 0x398   :  { %v1002_v45 = vpop.permute.xlu1 %1001 }
 0x399   :  { %1046 = vst.msk [vmem:[#allocation10 + $0x18] sm:$0xff] %vm320_vm0, %v1002_v45 }
 0x39c   :  { %v1000_v46 = vpop.permute.xlu1 %999 }
 0x39d   :  { %1045 = vst.msk [vmem:[#allocation10 + $0x10] sm:$0xff] %vm320_vm0, %v1000_v46 }
 0x3bd   :  { %v1903_v47 = vpop.f32.mrb[12].mxu0 }
 0x3be   :  { %1577 = vst.msk [vmem:[#allocation8 + $0x28] sm:$0xff] %vm320_vm0, %v1903_v47  ;;  %v1513_v48 = vpop.f32.mrb[13].mxu0 }
 0x3bf   :  { %1576 = vst.msk [vmem:[#allocation8 + $0x20] sm:$0xff] %vm320_vm0, %v1513_v48 }
 0x3c6   :  { %v1875_v49 = vpop.f32.mrb[12].mxu1 }
 0x3c7   :  { %968 = vst.msk [vmem:[#allocation7 + $0x28] sm:$0xff] %vm320_vm0, %v1875_v49  ;;  %1005 = vrot.lane.b32.xlu1 %v1875_v49, %s2089_s1  ;;  %v904_v50 = vpop.f32.mrb[13].mxu1 }
 0x3c8   :  { %967 = vst.msk [vmem:[#allocation7 + $0x20] sm:$0xff] %vm320_vm0, %v904_v50 }
 0x3cb   :  { %1003 = vrot.lane.b32.xlu1 %v904_v50, %s2089_s1 }
 0x3ce   :  { %v1878_v51 = vpop.f32.mrb[14].mxu1 }
 0x3cf   :  { %970 = vst.msk [vmem:[#allocation7 + $0x38] sm:$0xff] %vm320_vm0, %v1878_v51  ;;  %1009 = vrot.lane.b32.xlu0 %v1878_v51, %s2089_s1  ;;  %v914_v52 = vpop.f32.mrb[15].mxu1 }
 0x3d0   :  { %969 = vst.msk [vmem:[#allocation7 + $0x30] sm:$0xff] %vm320_vm0, %v914_v52  ;;  %1007 = vrot.lane.b32.xlu1 %v914_v52, %s2089_s1 }
 0x3d2   :  { %v1881_v53 = vpop.f32.mrb[16].mxu1 }
 0x3d3   :  { %972 = vst.msk [vmem:[#allocation7 + $0x48] sm:$0xff] %vm320_vm0, %v1881_v53  ;;  %1013 = vrot.lane.b32.xlu0 %v1881_v53, %s2089_s1  ;;  %v924_v54 = vpop.f32.mrb[17].mxu1 }
 0x3d4   :  { %971 = vst.msk [vmem:[#allocation7 + $0x40] sm:$0xff] %vm320_vm0, %v924_v54  ;;  %1011 = vrot.lane.b32.xlu1 %v924_v54, %s2089_s1 }
 0x3d6   :  { %v1884_v55 = vpop.f32.mrb[18].mxu1 }
 0x3d7   :  { %974 = vst.msk [vmem:[#allocation7 + $0x58] sm:$0xff] %vm320_vm0, %v1884_v55  ;;  %1017 = vrot.lane.b32.xlu0 %v1884_v55, %s2089_s1  ;;  %v934_v56 = vpop.f32.mrb[19].mxu1 }
 0x3d8   :  { %973 = vst.msk [vmem:[#allocation7 + $0x50] sm:$0xff] %vm320_vm0, %v934_v56  ;;  %1015 = vrot.lane.b32.xlu1 %v934_v56, %s2089_s1 }
 0x3da   :  { %v1887_v57 = vpop.f32.mrb[20].mxu1 }
 0x3db   :  { %976 = vst.msk [vmem:[#allocation7 + $0x68] sm:$0xff] %vm320_vm0, %v1887_v57  ;;  %1021 = vrot.lane.b32.xlu0 %v1887_v57, %s2089_s1  ;;  %v944_v58 = vpop.f32.mrb[21].mxu1 }
 0x3dc   :  { %975 = vst.msk [vmem:[#allocation7 + $0x60] sm:$0xff] %vm320_vm0, %v944_v58  ;;  %1019 = vrot.lane.b32.xlu1 %v944_v58, %s2089_s1 }
 0x3de   :  { %v1890_v59 = vpop.f32.mrb[22].mxu1 }
 0x3df   :  { %978 = vst.msk [vmem:[#allocation7 + $0x78] sm:$0xff] %vm320_vm0, %v1890_v59  ;;  %1025 = vrot.lane.b32.xlu0 %v1890_v59, %s2089_s1  ;;  %v954_v60 = vpop.f32.mrb[23].mxu1 }
 0x3e0   :  { %977 = vst.msk [vmem:[#allocation7 + $0x70] sm:$0xff] %vm320_vm0, %v954_v60  ;;  %1023 = vrot.lane.b32.xlu1 %v954_v60, %s2089_s1 }
 0x3e3   :  { %1606 = vrot.lane.b32.xlu0 %v1897_v39, %s2089_s1 }
 0x3e4   :  { %1604 = vrot.lane.b32.xlu1 %v1493_v40, %s2089_s1 }
 0x3e7   :  { %1610 = vrot.lane.b32.xlu0 %v1900_v41, %s2089_s1 }
 0x3e8   :  { %1608 = vrot.lane.b32.xlu1 %v1503_v42, %s2089_s1 }
 0x3eb   :  { %1614 = vrot.lane.b32.xlu0 %v1903_v47, %s2089_s1 }
 0x3ec   :  { %1612 = vrot.lane.b32.xlu1 %v1513_v48, %s2089_s1 }
 0x408   :  { %v1906_v61 = vpop.f32.mrb[14].mxu0 }
 0x409   :  { %1579 = vst.msk [vmem:[#allocation8 + $0x38] sm:$0xff] %vm320_vm0, %v1906_v61  ;;  %1618 = vrot.lane.b32.xlu0 %v1906_v61, %s2089_s1  ;;  %v1523_v62 = vpop.f32.mrb[15].mxu0 }
 0x40a   :  { %1578 = vst.msk [vmem:[#allocation8 + $0x30] sm:$0xff] %vm320_vm0, %v1523_v62  ;;  %1616 = vrot.lane.b32.xlu1 %v1523_v62, %s2089_s1 }
 0x40c   :  { %v1909_v63 = vpop.f32.mrb[16].mxu0 }
 0x40d   :  { %1581 = vst.msk [vmem:[#allocation8 + $0x48] sm:$0xff] %vm320_vm0, %v1909_v63  ;;  %1622 = vrot.lane.b32.xlu0 %v1909_v63, %s2089_s1  ;;  %v1533_v0 = vpop.f32.mrb[17].mxu0 }
 0x40e   :  { %1580 = vst.msk [vmem:[#allocation8 + $0x40] sm:$0xff] %vm320_vm0, %v1533_v0  ;;  %1620 = vrot.lane.b32.xlu1 %v1533_v0, %s2089_s1 }
 0x40f   :  { %1998 = shalt.err (!%p1995_p6)
}
 0x410   :  { %s1999_s23 = scalar_lea.hbm %s2392_s2, 2048 }
 0x411   :  { %p2000_p7 = scmp.ne.s32.totalorder %s2392_s2, %s1999_s23  ;;  %p2003_p8 = scmp.lt.u32.totalorder %s1999_s23, %s2392_s2 }
 0x413   :  { %p2005_p9 = pnand %p2003_p8, %p2000_p7 }
 0x415   :  { %2008 = shalt.err (!%p2005_p9)
}
 0x416   :  { %1679 = dma.vmem_to_hbm [thread:$0]  %s1674_s19, 2048, %s2392_s2, [#allocation4], %s2086_s28, %s2086_s28, %s2087_s29   ;;  %v1912_v1 = vpop.f32.mrb[18].mxu0 }
 0x417   :  { %1583 = vst.msk [vmem:[#allocation8 + $0x58] sm:$0xff] %vm320_vm0, %v1912_v1  ;;  %1626 = vrot.lane.b32.xlu0 %v1912_v1, %s2089_s1  ;;  %v1543_v2 = vpop.f32.mrb[19].mxu0  ;;  %s2091_s7 = smov [#allocation8]  }
 0x418   :  { %1582 = vst.msk [vmem:[#allocation8 + $0x50] sm:$0xff] %vm320_vm0, %v1543_v2  ;;  %1624 = vrot.lane.b32.xlu1 %v1543_v2, %s2089_s1  ;;  %v1915_v3 = vpop.f32.mrb[20].mxu0  ;;  %s1685_s8 = sshll.u32 %s2091_s7, 4  ;;  %s1686_s8 = int_to_ptr.vmem [resolvable:$true] %s1685_s8 }
 0x419   :  { %1585 = vst.msk [vmem:[#allocation8 + $0x68] sm:$0xff] %vm320_vm0, %v1915_v3  ;;  %v1553_v4 = vpop.f32.mrb[21].mxu0  ;;  %s2009_s2 = scalar_lea.vmem %s1686_s8, 2048  ;;  %p2014_p11 = scmp.lt.s32.totalorder %s1686_s8, %s1686_s8 }
 0x41a   :  { %1584 = vst.msk [vmem:[#allocation8 + $0x60] sm:$0xff] %vm320_vm0, %v1553_v4  ;;  %v1918_v5 = vpop.f32.mrb[22].mxu0  ;;  %p2010_p10 = scmp.ne.s32.totalorder %s1686_s8, %s2009_s2  ;;  %p2015_p12 = scmp.lt.s32.totalorder %s2009_s2, %s2009_s2 }
 0x41b   :  { %1630 = vrot.lane.b32.xlu0 %v1915_v3, %s2089_s1  ;;  %1587 = vst.msk [vmem:[#allocation8 + $0x78] sm:$0xff] %vm320_vm0, %v1918_v5  ;;  %v1563_v6 = vpop.f32.mrb[23].mxu0 }
 0x41c   :  { %1628 = vrot.lane.b32.xlu1 %v1553_v4, %s2089_s1  ;;  %1586 = vst.msk [vmem:[#allocation8 + $0x70] sm:$0xff] %vm320_vm0, %v1563_v6  ;;  %p2016_p13 = por %p2015_p12, %p2014_p11 }
 0x41e   :  { %p2017_p0 = pnand %p2016_p13, %p2010_p10 }
 0x41f   :  { %1634 = vrot.lane.b32.xlu0 %v1918_v5, %s2089_s1 }
 0x420   :  { %1632 = vrot.lane.b32.xlu1 %v1563_v6, %s2089_s1 }
 0x421   :  { %2020 = shalt.err (!%p2017_p0)
}
 0x422   :  { %s2021_s11 = scalar_lea.hbm %s2393_s3, 2048 }
 0x423   :  { %p2022_p1 = scmp.ne.s32.totalorder %s2393_s3, %s2021_s11  ;;  %p2025_p2 = scmp.lt.u32.totalorder %s2021_s11, %s2393_s3 }
 0x425   :  { %p2027_p3 = pnand %p2025_p2, %p2022_p1 }
 0x427   :  { %2030 = shalt.err (!%p2027_p3)
}
 0x428   :  { %1691 = dma.vmem_to_hbm [thread:$0]  %s1686_s8, 2048, %s2393_s3, [#allocation9], %s2086_s28, %s2086_s28, %s2087_s29  }
 0x429   :  { %s2092_s3 = smov [#allocation10]  }
 0x42a   :  { %s1697_s17 = sshll.u32 %s2092_s3, 4  ;;  %s1698_s17 = int_to_ptr.vmem [resolvable:$true] %s1697_s17 }
 0x42b   :  { %s2031_s1 = scalar_lea.vmem %s1698_s17, 2048  ;;  %p2036_p5 = scmp.lt.s32.totalorder %s1698_s17, %s1698_s17 }
 0x42c   :  { %p2032_p4 = scmp.ne.s32.totalorder %s1698_s17, %s2031_s1  ;;  %p2037_p6 = scmp.lt.s32.totalorder %s2031_s1, %s2031_s1 }
 0x42e   :  { %p2038_p7 = por %p2037_p6, %p2036_p5 }
 0x430   :  { %p2039_p8 = pnand %p2038_p7, %p2032_p4 }
 0x439   :  { %v1006_v7 = vpop.permute.xlu1 %1005 }
 0x43a   :  { %1048 = vst.msk [vmem:[#allocation10 + $0x28] sm:$0xff] %vm320_vm0, %v1006_v7 }
 0x43d   :  { %v1004_v8 = vpop.permute.xlu1 %1003 }
 0x43e   :  { %1047 = vst.msk [vmem:[#allocation10 + $0x20] sm:$0xff] %vm320_vm0, %v1004_v8 }
 0x441   :  { %v1010_v9 = vpop.permute.xlu0 %1009 }
 0x442   :  { %1050 = vst.msk [vmem:[#allocation10 + $0x38] sm:$0xff] %vm320_vm0, %v1010_v9  ;;  %v1008_v10 = vpop.permute.xlu1 %1007 }
 0x443   :  { %1049 = vst.msk [vmem:[#allocation10 + $0x30] sm:$0xff] %vm320_vm0, %v1008_v10 }
 0x445   :  { %v1014_v11 = vpop.permute.xlu0 %1013 }
 0x446   :  { %1052 = vst.msk [vmem:[#allocation10 + $0x48] sm:$0xff] %vm320_vm0, %v1014_v11  ;;  %v1012_v12 = vpop.permute.xlu1 %1011 }
 0x447   :  { %1051 = vst.msk [vmem:[#allocation10 + $0x40] sm:$0xff] %vm320_vm0, %v1012_v12 }
 0x449   :  { %v1018_v13 = vpop.permute.xlu0 %1017 }
 0x44a   :  { %1054 = vst.msk [vmem:[#allocation10 + $0x58] sm:$0xff] %vm320_vm0, %v1018_v13  ;;  %v1016_v14 = vpop.permute.xlu1 %1015 }
 0x44b   :  { %1053 = vst.msk [vmem:[#allocation10 + $0x50] sm:$0xff] %vm320_vm0, %v1016_v14 }
 0x44d   :  { %v1022_v15 = vpop.permute.xlu0 %1021 }
 0x44e   :  { %1056 = vst.msk [vmem:[#allocation10 + $0x68] sm:$0xff] %vm320_vm0, %v1022_v15  ;;  %v1020_v16 = vpop.permute.xlu1 %1019 }
 0x44f   :  { %1055 = vst.msk [vmem:[#allocation10 + $0x60] sm:$0xff] %vm320_vm0, %v1020_v16 }
 0x451   :  { %v1026_v17 = vpop.permute.xlu0 %1025 }
 0x452   :  { %1058 = vst.msk [vmem:[#allocation10 + $0x78] sm:$0xff] %vm320_vm0, %v1026_v17  ;;  %v1024_v18 = vpop.permute.xlu1 %1023 }
 0x453   :  { %1057 = vst.msk [vmem:[#allocation10 + $0x70] sm:$0xff] %vm320_vm0, %v1024_v18 }
 0x454   :  { %2042 = shalt.err (!%p2039_p8)
}
 0x455   :  { %s2043_s20 = scalar_lea.hbm %s2394_s4, 2048 }
 0x456   :  { %p2044_p9 = scmp.ne.s32.totalorder %s2394_s4, %s2043_s20  ;;  %p2047_p10 = scmp.lt.u32.totalorder %s2043_s20, %s2394_s4 }
 0x458   :  { %p2049_p11 = pnand %p2047_p10, %p2044_p9 }
 0x45a   :  { %2052 = shalt.err (!%p2049_p11)
}
 0x45b   :  { %1703 = dma.vmem_to_hbm [thread:$0]  %s1698_s17, 2048, %s2394_s4, [#allocation9], %s2086_s28, %s2086_s28, %s2087_s29   ;;  %v1607_v19 = vpop.permute.xlu0 %1606  ;;  %v1605_v20 = vpop.permute.xlu1 %1604 }
 0x45c   :  { %1653 = vst.msk [vmem:[#allocation11 + $0x8] sm:$0xff] %vm320_vm0, %v1607_v19  ;;  %1652 = vst.msk [vmem:[#allocation11] sm:$0xff] %vm320_vm0, %v1605_v20  ;;  %s2093_s4 = smov [#allocation11]  }
 0x45d   :  { %s1709_s27 = sshll.u32 %s2093_s4, 4  ;;  %s1710_s27 = int_to_ptr.vmem [resolvable:$true] %s1709_s27 }
 0x45e   :  { %s2053_s30 = scalar_lea.vmem %s1710_s27, 2048  ;;  %p2058_p13 = scmp.lt.s32.totalorder %s1710_s27, %s1710_s27 }
 0x45f   :  { %v1611_v21 = vpop.permute.xlu0 %1610  ;;  %v1609_v22 = vpop.permute.xlu1 %1608  ;;  %p2054_p12 = scmp.ne.s32.totalorder %s1710_s27, %s2053_s30  ;;  %p2059_p0 = scmp.lt.s32.totalorder %s2053_s30, %s2053_s30 }
 0x460   :  { %1655 = vst.msk [vmem:[#allocation11 + $0x18] sm:$0xff] %vm320_vm0, %v1611_v21  ;;  %1654 = vst.msk [vmem:[#allocation11 + $0x10] sm:$0xff] %vm320_vm0, %v1609_v22 }
 0x461   :  { %p2060_p1 = por %p2059_p0, %p2058_p13 }
 0x463   :  { %v1615_v23 = vpop.permute.xlu0 %1614  ;;  %v1613_v24 = vpop.permute.xlu1 %1612  ;;  %p2061_p2 = pnand %p2060_p1, %p2054_p12 }
 0x464   :  { %1657 = vst.msk [vmem:[#allocation11 + $0x28] sm:$0xff] %vm320_vm0, %v1615_v23  ;;  %1656 = vst.msk [vmem:[#allocation11 + $0x20] sm:$0xff] %vm320_vm0, %v1613_v24 }
 0x47b   :  { %v1619_v25 = vpop.permute.xlu0 %1618 }
 0x47c   :  { %1659 = vst.msk [vmem:[#allocation11 + $0x38] sm:$0xff] %vm320_vm0, %v1619_v25  ;;  %v1617_v26 = vpop.permute.xlu1 %1616 }
 0x47d   :  { %1658 = vst.msk [vmem:[#allocation11 + $0x30] sm:$0xff] %vm320_vm0, %v1617_v26 }
 0x47f   :  { %v1623_v27 = vpop.permute.xlu0 %1622 }
 0x480   :  { %1661 = vst.msk [vmem:[#allocation11 + $0x48] sm:$0xff] %vm320_vm0, %v1623_v27  ;;  %v1621_v28 = vpop.permute.xlu1 %1620 }
 0x481   :  { %1660 = vst.msk [vmem:[#allocation11 + $0x40] sm:$0xff] %vm320_vm0, %v1621_v28 }
 0x489   :  { %v1627_v29 = vpop.permute.xlu0 %1626 }
 0x48a   :  { %1663 = vst.msk [vmem:[#allocation11 + $0x58] sm:$0xff] %vm320_vm0, %v1627_v29  ;;  %v1625_v30 = vpop.permute.xlu1 %1624 }
 0x48b   :  { %1662 = vst.msk [vmem:[#allocation11 + $0x50] sm:$0xff] %vm320_vm0, %v1625_v30 }
 0x48d   :  { %v1631_v31 = vpop.permute.xlu0 %1630 }
 0x48e   :  { %1665 = vst.msk [vmem:[#allocation11 + $0x68] sm:$0xff] %vm320_vm0, %v1631_v31  ;;  %v1629_v32 = vpop.permute.xlu1 %1628 }
 0x48f   :  { %1664 = vst.msk [vmem:[#allocation11 + $0x60] sm:$0xff] %vm320_vm0, %v1629_v32 }
 0x491   :  { %v1635_v33 = vpop.permute.xlu0 %1634 }
 0x492   :  { %1667 = vst.msk [vmem:[#allocation11 + $0x78] sm:$0xff] %vm320_vm0, %v1635_v33  ;;  %v1633_v34 = vpop.permute.xlu1 %1632 }
 0x493   :  { %1666 = vst.msk [vmem:[#allocation11 + $0x70] sm:$0xff] %vm320_vm0, %v1633_v34 }
 0x494   :  { %2064 = shalt.err (!%p2061_p2)
}
 0x495   :  { %s2065_s8 = scalar_lea.hbm %s2395_s5, 2048 }
 0x496   :  { %p2066_p3 = scmp.ne.s32.totalorder %s2395_s5, %s2065_s8  ;;  %p2069_p4 = scmp.lt.u32.totalorder %s2065_s8, %s2395_s5 }
 0x498   :  { %p2071_p5 = pnand %p2069_p4, %p2066_p3 }
 0x49a   :  { %2074 = shalt.err (!%p2071_p5)
}
 0x49b   :  { %1715 = dma.vmem_to_hbm [thread:$0]  %s1710_s27, 2048, %s2395_s5, [#allocation12], %s2086_s28, %s2086_s28, %s2087_s29  }
 0x49c   :  { %2079 = dma.done.wait [#allocation4], 2048  }
 0x49d   :  { %2080 = vsyncadd [#allocation4], 4294965248 }
 0x49e   :  { %2081 = dma.done.wait [#allocation9], 4096  }
 0x49f   :  { %2082 = vsyncadd [#allocation9], 4294963200 }
 0x4a0   :  { %2083 = dma.done.wait [#allocation12], 2048  }
 0x4a1   :  { %2084 = vsyncadd [#allocation12], 4294965248 }
 0x4a2   :  { %1728 = vsyncpa [#allocation3], 1 }
 0x4a3   :  { %1729 = vsyncpa [#allocation6], 1 }
 0x4a4   :  { %1730 = vsyncpa [#allocation4], 1 }
 0x4a5   :  { %1731 = vsyncpa [#allocation9], 1 }
 0x4a6   :  { %1732 = vsyncpa [#allocation12], 1 }

</bundles_post_ra>
